<compile_context>
chip_gen: v6e
topology: v6e:2x2x1
jax: 0.10.0
libtpu: 0.0.40
codegen_flags: <defaults>
</compile_context>

<pallas_src>
import functools

import jax
import jax.numpy as jnp
from jax.experimental import pallas as pl
from jax.experimental.pallas import tpu as pltpu


# ------------------------- configuration (small) -------------------------
S_GRID = 2          # config.MODEL.S
B_BOXES = 2         # config.MODEL.B
C_CLASSES = 6       # config.MODEL.C
D_OUT = S_GRID * S_GRID * (5 * B_BOXES + C_CLASSES)   # 2*2*16 = 64
D_PAD = 128                                            # lane-dense padded head dim

PATCH = 4
IMG_H = IMG_W = 16
IN_CH = 3
N_PATCH = (IMG_H // PATCH) * (IMG_W // PATCH)          # 16 tokens (multiple of 8)
P_DIM = IN_CH * PATCH * PATCH                          # 48
EMBED = 64                                             # backbone feature dim
LN_EPS = 1e-5


def _round_up(v, m):
    return (v + m - 1) // m * m


# ------------------------------ Pallas kernel -----------------------------
def yolo_head_kernel(patches_ref, w_emb_ref, b_emb_ref,
                     gamma_ref, beta_ref, w_head_ref, b_head_ref, out_ref):
    # patches_ref: (TB*N_PATCH, P_DIM) bf16  -- TB samples per grid step.
    tb = patches_ref.shape[0] // N_PATCH                       # static at trace time

    # Patch embedding (conv-as-matmul): bf16 inputs, f32 accumulation on MXU.
    feat = jnp.dot(patches_ref[...], w_emb_ref[...],
                   preferred_element_type=jnp.float32)         # (TB*N, E) f32
    feat = feat + b_emb_ref[...]                               # (1, E) broadcast

    # LayerNorm over the embedding dim (the trainable 'norm'), f32 statistics.
    mu = jnp.mean(feat, axis=-1, keepdims=True)
    var = jnp.mean(jnp.square(feat - mu), axis=-1, keepdims=True)
    feat = (feat - mu) * jax.lax.rsqrt(var + LN_EPS)
    feat = feat * gamma_ref[...] + beta_ref[...]

    # Global token mean-pool per sample. Tokens are sample-major, so splitting
    # the second-minor dim (TB*N -> TB, N with N = 16, a multiple of the f32
    # sublane tile) is a free layout reshape; the reduction runs on the XLU.
    pooled = jnp.mean(feat.reshape(tb, N_PATCH, EMBED), axis=1)  # (TB, E) f32

    # Classifier head (reset_classifier linear, lane-padded to 128): bf16 MXU
    # matmul with f32 accumulation, then sigmoid, lane-dense (TB, 128) store.
    logits = jnp.dot(pooled.astype(jnp.bfloat16), w_head_ref[...],
                     preferred_element_type=jnp.float32)       # (TB, D_PAD)
    logits = logits + b_head_ref[...]
    out_ref[...] = jax.nn.sigmoid(logits)


# ------------------------------ wrapper ------------------------------------
def _choose_tb(bsz):
    """Batch tile: multiple of 8, >= 2 grid steps when possible, cap 512,
    and (when cheap) a divisor of bsz so the padding copy is a no-op."""
    if bsz <= 8:
        return 8
    cand = min(512, _round_up(-(-bsz // 2), 8))       # ceil(bsz/2), 8-aligned
    if bsz % 8 == 0:
        for t in range(cand, max(cand // 2, 8) - 1, -8):
            if bsz % t == 0:
                return t
    return cand


@functools.partial(jax.jit, static_argnames=("tb",))
def yolo_forward(x, params, *, tb=None):
    """x: [B, 3, H, W] float32 (NCHW, like PyTorch). Returns (B, S, S, 5*Bb+C)."""
    bsz = x.shape[0]
    if tb is None:
        tb = _choose_tb(bsz)
    padded = _round_up(bsz, tb)
    hp, wp = IMG_H // PATCH, IMG_W // PATCH

    # Glue: extract patches (channel-major flatten, matches w_emb layout).
    patches = x.reshape(bsz, IN_CH, hp, PATCH, wp, PATCH)
    patches = jnp.transpose(patches, (0, 2, 4, 1, 3, 5))       # [B,hp,wp,C,ph,pw]
    patches = patches.reshape(bsz * N_PATCH, P_DIM).astype(jnp.bfloat16)
    if padded != bsz:                                          # no-op when tb | bsz
        patches = jnp.pad(patches, ((0, (padded - bsz) * N_PATCH), (0, 0)))

    # 2-D, lane-friendly parameter layouts (grid-invariant -> VMEM-resident).
    w_emb = params["w_emb"].astype(jnp.bfloat16)               # (P_DIM, EMBED)
    b_emb = params["b_emb"].reshape(1, EMBED)
    gamma = params["gamma"].reshape(1, EMBED)
    beta = params["beta"].reshape(1, EMBED)
    w_head = (jnp.zeros((EMBED, D_PAD), jnp.float32)
              .at[:, :D_OUT].set(params["w_head"])).astype(jnp.bfloat16)
    b_head = jnp.zeros((1, D_PAD), jnp.float32).at[:, :D_OUT].set(params["b_head"])

    cost = pl.CostEstimate(
        flops=(2 * padded * N_PATCH * P_DIM * EMBED          # patch embed
               + 2 * padded * EMBED * D_PAD                   # head
               + padded * N_PATCH * EMBED),                   # pool
        transcendentals=padded * (D_PAD + N_PATCH),           # sigmoid + rsqrt
        bytes_accessed=(patches.size * 2                      # bf16 patch stream
                        + padded * D_PAD * 4                  # f32 output
                        + (P_DIM + EMBED) * EMBED * 2         # weights (approx)
                        ),
    )

    out = pl.pallas_call(
        yolo_head_kernel,
        out_shape=jax.ShapeDtypeStruct((padded, D_PAD), jnp.float32),
        grid_spec=pltpu.PrefetchScalarGridSpec(
            num_scalar_prefetch=0,
            grid=(padded // tb,),
            in_specs=[
                pl.BlockSpec((tb * N_PATCH, P_DIM), lambda b: (b, 0)),   # patches
                pl.BlockSpec((P_DIM, EMBED), lambda b: (0, 0)),          # w_emb
                pl.BlockSpec((1, EMBED), lambda b: (0, 0)),              # b_emb
                pl.BlockSpec((1, EMBED), lambda b: (0, 0)),              # gamma
                pl.BlockSpec((1, EMBED), lambda b: (0, 0)),              # beta
                pl.BlockSpec((EMBED, D_PAD), lambda b: (0, 0)),          # w_head
                pl.BlockSpec((1, D_PAD), lambda b: (0, 0)),              # b_head
            ],
            out_specs=pl.BlockSpec((tb, D_PAD), lambda b: (b, 0)),
        ),
        compiler_params=pltpu.CompilerParams(
            dimension_semantics=("parallel",),                 # disjoint batch tiles
            vmem_limit_bytes=32 * 1024 * 1024),                # headroom for tb=512
        cost_estimate=cost,
    )(patches, w_emb, b_emb, gamma, beta, w_head, b_head)

    # Strip batch / lane padding, then torch.reshape(out, (-1, S, S, 5*B + C)).
    out = out[:bsz, :D_OUT]
    return out.reshape(-1, S_GRID, S_GRID, 5 * B_BOXES + C_CLASSES)


def init_params(key):
    k1, k2, k3 = jax.random.split(key, 3)
    return {
        "w_emb": (jax.random.normal(k1, (P_DIM, EMBED), jnp.float32)
                  * (1.0 / jnp.sqrt(P_DIM))),
        "b_emb": jnp.zeros((EMBED,), jnp.float32),
        "gamma": jnp.ones((EMBED,), jnp.float32),
        "beta": jnp.zeros((EMBED,), jnp.float32),
        "w_head": (jax.random.normal(k2, (EMBED, D_OUT), jnp.float32)
                   * (1.0 / jnp.sqrt(EMBED))),
        "b_head": (jax.random.normal(k3, (D_OUT,), jnp.float32) * 0.01),
    }


if __name__ == "__main__":
    key = jax.random.PRNGKey(0)
    kx, kp = jax.random.split(key)
    x = jax.random.normal(kx, (2, IN_CH, IMG_H, IMG_W), jnp.float32)
    params = init_params(kp)

    out = yolo_forward(x, params)
    out = jax.block_until_ready(out)

    assert out.shape == (2, S_GRID, S_GRID, 5 * B_BOXES + C_CLASSES), out.shape
    assert bool(jnp.all((out >= 0.0) & (out <= 1.0)))   # sigmoid range
    assert bool(jnp.all(jnp.isfinite(out)))
    print("KERNEL_OK")
</pallas_src>

<mosaic_0001>
module attributes {stable_mosaic.version = 11 : i64} {
  func.func @yolo_head_kernel(%arg0: i32, %arg1: memref<128x48xbf16, #tpu.memory_space<vmem>>, %arg2: memref<48x64xbf16, #tpu.memory_space<vmem>>, %arg3: memref<1x64xf32, #tpu.memory_space<vmem>>, %arg4: memref<1x64xf32, #tpu.memory_space<vmem>>, %arg5: memref<1x64xf32, #tpu.memory_space<vmem>>, %arg6: memref<64x128xbf16, #tpu.memory_space<vmem>>, %arg7: memref<1x128xf32, #tpu.memory_space<vmem>>, %arg8: memref<8x128xf32, #tpu.memory_space<vmem>>) attributes {dimension_semantics = [#tpu.dimension_semantics<parallel>], iteration_bounds = array<i64: 1>, scalar_prefetch = 0 : i64, scratch_operands = 0 : i64, tpu.core_type = #tpu.core_type<tc>, window_params = [{transform_indices = @transform_0, window_bounds = array<i64: 128, 48>}, {pipeline_mode = #tpu.pipeline_mode<synchronous>, transform_indices = @transform_1, window_bounds = array<i64: 48, 64>}, {pipeline_mode = #tpu.pipeline_mode<synchronous>, transform_indices = @transform_2, window_bounds = array<i64: 1, 64>}, {pipeline_mode = #tpu.pipeline_mode<synchronous>, transform_indices = @transform_3, window_bounds = array<i64: 1, 64>}, {pipeline_mode = #tpu.pipeline_mode<synchronous>, transform_indices = @transform_4, window_bounds = array<i64: 1, 64>}, {pipeline_mode = #tpu.pipeline_mode<synchronous>, transform_indices = @transform_5, window_bounds = array<i64: 64, 128>}, {pipeline_mode = #tpu.pipeline_mode<synchronous>, transform_indices = @transform_6, window_bounds = array<i64: 1, 128>}, {transform_indices = @transform_7, window_bounds = array<i64: 8, 128>}]} {
    %c0 = arith.constant 0 : index
    %c0_0 = arith.constant 0 : index
    %0 = vector.load %arg1[%c0, %c0_0] : memref<128x48xbf16, #tpu.memory_space<vmem>>, vector<128x48xbf16>
    %c0_1 = arith.constant 0 : index
    %c0_2 = arith.constant 0 : index
    %1 = vector.load %arg2[%c0_1, %c0_2] : memref<48x64xbf16, #tpu.memory_space<vmem>>, vector<48x64xbf16>
    %cst = arith.constant dense<0.000000e+00> : vector<128x64xf32>
    %2 = tpu.matmul %0, %1, %cst {dimension_numbers = #tpu.dot_dimension_numbers<[1], [0], [0], [1], [0, 0, 1, 1], [], []>} : vector<128x48xbf16>, vector<48x64xbf16>, vector<128x64xf32> -> vector<128x64xf32>
    %c0_3 = arith.constant 0 : index
    %c0_4 = arith.constant 0 : index
    %3 = vector.load %arg3[%c0_3, %c0_4] : memref<1x64xf32, #tpu.memory_space<vmem>>, vector<1x64xf32>
    %4 = vector.broadcast %3 : vector<1x64xf32> to vector<128x64xf32>
    %5 = arith.addf %2, %4 : vector<128x64xf32>
    %cst_5 = arith.constant dense<0.000000e+00> : vector<128xf32>
    %6 = vector.multi_reduction <add>, %5, %cst_5 [1] : vector<128x64xf32> to vector<128xf32>
    %7 = vector.shape_cast %6 : vector<128xf32> to vector<128x1xf32>
    %cst_6 = arith.constant 6.400000e+01 : f32
    %8 = vector.broadcast %cst_6 : f32 to vector<128x1xf32>
    %9 = arith.divf %7, %8 : vector<128x1xf32>
    %10 = vector.broadcast %9 : vector<128x1xf32> to vector<128x64xf32>
    %11 = arith.subf %5, %10 : vector<128x64xf32>
    %12 = arith.mulf %11, %11 : vector<128x64xf32>
    %cst_7 = arith.constant dense<0.000000e+00> : vector<128xf32>
    %13 = vector.multi_reduction <add>, %12, %cst_7 [1] : vector<128x64xf32> to vector<128xf32>
    %14 = vector.shape_cast %13 : vector<128xf32> to vector<128x1xf32>
    %cst_8 = arith.constant 6.400000e+01 : f32
    %15 = vector.broadcast %cst_8 : f32 to vector<128x1xf32>
    %16 = arith.divf %14, %15 : vector<128x1xf32>
    %17 = vector.broadcast %9 : vector<128x1xf32> to vector<128x64xf32>
    %18 = arith.subf %5, %17 : vector<128x64xf32>
    %cst_9 = arith.constant 9.99999974E-6 : f32
    %19 = vector.broadcast %cst_9 : f32 to vector<128x1xf32>
    %20 = arith.addf %16, %19 : vector<128x1xf32>
    %21 = math.rsqrt %20 : vector<128x1xf32>
    %22 = vector.broadcast %21 : vector<128x1xf32> to vector<128x64xf32>
    %23 = arith.mulf %18, %22 : vector<128x64xf32>
    %c0_10 = arith.constant 0 : index
    %c0_11 = arith.constant 0 : index
    %24 = vector.load %arg4[%c0_10, %c0_11] : memref<1x64xf32, #tpu.memory_space<vmem>>, vector<1x64xf32>
    %25 = vector.broadcast %24 : vector<1x64xf32> to vector<128x64xf32>
    %26 = arith.mulf %23, %25 : vector<128x64xf32>
    %c0_12 = arith.constant 0 : index
    %c0_13 = arith.constant 0 : index
    %27 = vector.load %arg5[%c0_12, %c0_13] : memref<1x64xf32, #tpu.memory_space<vmem>>, vector<1x64xf32>
    %28 = vector.broadcast %27 : vector<1x64xf32> to vector<128x64xf32>
    %29 = arith.addf %26, %28 : vector<128x64xf32>
    %30 = vector.shape_cast %29 : vector<128x64xf32> to vector<8x16x64xf32>
    %cst_14 = arith.constant dense<0.000000e+00> : vector<8x64xf32>
    %31 = vector.multi_reduction <add>, %30, %cst_14 [1] : vector<8x16x64xf32> to vector<8x64xf32>
    %cst_15 = arith.constant 1.600000e+01 : f32
    %32 = vector.broadcast %cst_15 : f32 to vector<8x64xf32>
    %33 = arith.divf %31, %32 : vector<8x64xf32>
    %34 = arith.truncf %33 : vector<8x64xf32> to vector<8x64xbf16>
    %c0_16 = arith.constant 0 : index
    %c0_17 = arith.constant 0 : index
    %35 = vector.load %arg6[%c0_16, %c0_17] : memref<64x128xbf16, #tpu.memory_space<vmem>>, vector<64x128xbf16>
    %cst_18 = arith.constant dense<0.000000e+00> : vector<8x128xf32>
    %36 = tpu.matmul %34, %35, %cst_18 {dimension_numbers = #tpu.dot_dimension_numbers<[1], [0], [0], [1], [0, 0, 1, 1], [], []>} : vector<8x64xbf16>, vector<64x128xbf16>, vector<8x128xf32> -> vector<8x128xf32>
    %c0_19 = arith.constant 0 : index
    %c0_20 = arith.constant 0 : index
    %37 = vector.load %arg7[%c0_19, %c0_20] : memref<1x128xf32, #tpu.memory_space<vmem>>, vector<1x128xf32>
    %38 = vector.broadcast %37 : vector<1x128xf32> to vector<8x128xf32>
    %39 = arith.addf %36, %38 : vector<8x128xf32>
    %40 = arith.negf %39 : vector<8x128xf32>
    %41 = math.exp %40 : vector<8x128xf32>
    %cst_21 = arith.constant 1.000000e+00 : f32
    %42 = vector.broadcast %cst_21 : f32 to vector<8x128xf32>
    %43 = arith.addf %42, %41 : vector<8x128xf32>
    %44 = arith.divf %42, %43 : vector<8x128xf32>
    %c0_22 = arith.constant 0 : index
    %c0_23 = arith.constant 0 : index
    %45 = vector.load %arg8[%c0_22, %c0_23] : memref<8x128xf32, #tpu.memory_space<vmem>>, vector<8x128xf32>
    tpu.vector_store %arg8[%c0_22, %c0_23], %44 {strides = array<i32>} : memref<8x128xf32, #tpu.memory_space<vmem>>, vector<8x128xf32>,
    return
  }
  func.func @transform_0(%arg0: i32) -> (i32, i32) {
    %c0_i32 = arith.constant 0 : i32
    %c0_i32_0 = arith.constant 0 : i32
    return %arg0, %c0_i32 : i32, i32
  }
  func.func @transform_1(%arg0: i32) -> (i32, i32) {
    %c0_i32 = arith.constant 0 : i32
    %c0_i32_0 = arith.constant 0 : i32
    %c0_i32_1 = arith.constant 0 : i32
    return %c0_i32, %c0_i32_0 : i32, i32
  }
  func.func @transform_2(%arg0: i32) -> (i32, i32) {
    %c0_i32 = arith.constant 0 : i32
    %c0_i32_0 = arith.constant 0 : i32
    %c0_i32_1 = arith.constant 0 : i32
    return %c0_i32, %c0_i32_0 : i32, i32
  }
  func.func @transform_3(%arg0: i32) -> (i32, i32) {
    %c0_i32 = arith.constant 0 : i32
    %c0_i32_0 = arith.constant 0 : i32
    %c0_i32_1 = arith.constant 0 : i32
    return %c0_i32, %c0_i32_0 : i32, i32
  }
  func.func @transform_4(%arg0: i32) -> (i32, i32) {
    %c0_i32 = arith.constant 0 : i32
    %c0_i32_0 = arith.constant 0 : i32
    %c0_i32_1 = arith.constant 0 : i32
    return %c0_i32, %c0_i32_0 : i32, i32
  }
  func.func @transform_5(%arg0: i32) -> (i32, i32) {
    %c0_i32 = arith.constant 0 : i32
    %c0_i32_0 = arith.constant 0 : i32
    %c0_i32_1 = arith.constant 0 : i32
    return %c0_i32, %c0_i32_0 : i32, i32
  }
  func.func @transform_6(%arg0: i32) -> (i32, i32) {
    %c0_i32 = arith.constant 0 : i32
    %c0_i32_0 = arith.constant 0 : i32
    %c0_i32_1 = arith.constant 0 : i32
    return %c0_i32, %c0_i32_0 : i32, i32
  }
  func.func @transform_7(%arg0: i32) -> (i32, i32) {
    %c0_i32 = arith.constant 0 : i32
    %c0_i32_0 = arith.constant 0 : i32
    return %arg0, %c0_i32 : i32, i32
  }
}

</mosaic_0001>

<bundles_post_ra>
// kernel: yolo_forward.1
= control target key start
LH: loop header
LB: loop body
LE: loop exit
PB: predicated region body
PF: predicated region fallthrough
CT: control target
= control target key end

     0   :  { %vm114_vm0 = vcmask 392192   ;;  %vm236_vm1 = vcmask 523264   ;;  %vm838_vm2 = vmmov 0   ;;  %vm612_vm3 = vcmask 1041409   ;;  %s1176_s1 = inlined_call_operand.vmem [shape: bf16[48,64], index: 1, kind: input, shape index: {}]   ;;  %s1177_s0 = inlined_call_operand.vmem [shape: bf16[128,48], index: 0, kind: input, shape index: {}]   ;;  %s1178_s2 = inlined_call_operand.vmem [shape: f32[1,64], index: 2, kind: input, shape index: {}]   ;;  %s1179_s5 = inlined_call_operand.vmem [shape: bf16[64,128], index: 5, kind: input, shape index: {}]   ;;  %s1180_s3 = inlined_call_operand.vmem [shape: f32[1,64], index: 3, kind: input, shape index: {}]   ;;  %s1181_s4 = inlined_call_operand.vmem [shape: f32[1,64], index: 4, kind: input, shape index: {}]   ;;  %s1182_s6 = inlined_call_operand.vmem [shape: f32[1,128], index: 6, kind: input, shape index: {}]   ;;  %s1183_s7 = inlined_call_operand.vmem [shape: f32[8,128], index: 7, kind: output, shape index: {}]  }
   0x1   :  { %v786_v0 = vld [vmem:[%s1176_s1 + $0x10] sm:$0xff]   ;;  %v787_v1 = vld [vmem:[%s1176_s1 + $0x8] sm:$0xff]   ;;  %v789_v2 = vld [vmem:[%s1177_s0] sm:$0xff]   ;;  %vm614_vm4 = vcmask 1042434   ;;  %vm616_vm5 = vcmask 1043459   ;;  %vm618_vm6 = vcmask 1044484  }
   0x2   :  { %750 = vmatprep.subr.bf16.mxu0 %v786_v0  ;;  %v788_v3 = vld [vmem:[%s1176_s1] sm:$0xff]   ;;  %756 = vmatprep.mubr.msk.bf16.mxu0 %vm114_vm0, %v789_v2  ;;  %v790_v4 = vld [vmem:[%s1177_s0 + $0x8] sm:$0xff]   ;;  %v791_v5 = vld [vmem:[%s1177_s0 + $0x10] sm:$0xff]   ;;  %vm620_vm7 = vcmask 1045509   ;;  %vm622_vm8 = vcmask 1046534   ;;  %vm624_vm9 = vcmask 1047559  }
   0x3   :  { %751 = vmatpush3.bf16.msra.mxu0 %v786_v0  ;;  %v792_v6 = vld [vmem:[%s1177_s0 + $0x18] sm:$0xff]   ;;  %v793_v7 = vld [vmem:[%s1177_s0 + $0x20] sm:$0xff]   ;;  %v794_v8 = vld [vmem:[%s1177_s0 + $0x28] sm:$0xff]  }
   0x4   :  { %752 = vmatprep.subr.bf16.mxu0 %v787_v1  ;;  %v795_v9 = vld [vmem:[%s1177_s0 + $0x30] sm:$0xff]   ;;  %v796_v10 = vld [vmem:[%s1177_s0 + $0x38] sm:$0xff]   ;;  %v705_v11 = vld [vmem:[%s1178_s2] ss:$0 sm:$0xff] }
   0x7   :  { %753 = vmatpush3.bf16.msra.mxu0 %v787_v1 }
   0x8   :  { %754 = vmatprep.subr.bf16.mxu0 %v788_v3 }
   0xb   :  { %755 = vmatpush3.bf16.msra.mxu0 %v788_v3 }
   0xe   :  { %757 = vmatmul.mubr.msk.bf16.vlgmr.msra.gmra.mxu0 %vm114_vm0, %v790_v4 }
   0xf   :  { %760 = vmatprep.mubr.msk.bf16.mxu0 %vm114_vm0, %v791_v5 }
  0x16   :  { %761 = vmatmul.mubr.msk.bf16.gmra.mxu0 %vm114_vm0, %v792_v6 }
  0x17   :  { %764 = vmatprep.mubr.msk.bf16.mxu0 %vm114_vm0, %v793_v7 }
  0x1e   :  { %765 = vmatmul.mubr.msk.bf16.gmra.mxu0 %vm114_vm0, %v794_v8 }
  0x1f   :  { %768 = vmatprep.mubr.msk.bf16.mxu0 %vm114_vm0, %v795_v9 }
  0x26   :  { %769 = vmatmul.mubr.msk.bf16.gmra.mxu0 %vm114_vm0, %v796_v10 }
  0xce   :  { %v758_v12 = vpop.f32.mrf.mxu0 }
  0xcf   :  { %v923_v13 = vadd.f32 %v758_v12, %v705_v11 }
  0xd0   :  { %v173_v14 = vpop.f32.mrf.mxu0 }
  0xd1   :  { %v925_v15 = vadd.f32 %v705_v11, %v173_v14  ;;  %v243_v16 = vsel %vm236_vm1, %v923_v13, 0.0 }
  0xd2   :  { %244 = vadd.xlane.f32.xlu1 %v243_v16  ;;  %v759_v17 = vpop.f32.mrf.mxu0 }
  0xd3   :  { %v929_v18 = vadd.f32 %v759_v17, %v705_v11  ;;  %v237_v19 = vsel %vm236_vm1, %v925_v15, 0.0 }
  0xd4   :  { %v176_v20 = vpop.f32.mrf.mxu0  ;;  %238 = vadd.xlane.f32.xlu0 %v237_v19 }
  0xd5   :  { %v933_v21 = vadd.f32 %v705_v11, %v176_v20  ;;  %v246_v22 = vsel %vm236_vm1, %v929_v18, 0.0 }
  0xd6   :  { %247 = vadd.xlane.f32.xlu1 %v246_v22  ;;  %v762_v23 = vpop.f32.mrf.mxu0 }
  0xd7   :  { %v937_v24 = vadd.f32 %v762_v23, %v705_v11  ;;  %v240_v25 = vsel %vm236_vm1, %v933_v21, 0.0 }
  0xd8   :  { %v189_v26 = vpop.f32.mrf.mxu0  ;;  %241 = vadd.xlane.f32.xlu0 %v240_v25 }
  0xd9   :  { %v941_v28 = vadd.f32 %v705_v11, %v189_v26  ;;  %v255_v30 = vsel %vm236_vm1, %v937_v24, 0.0 }
  0xda   :  { %v763_v27 = vpop.f32.mrf.mxu0 }
  0xdb   :  { %v943_v29 = vadd.f32 %v763_v27, %v705_v11  ;;  %v249_v36 = vsel %vm236_vm1, %v941_v28, 0.0 }
  0xdc   :  { %v192_v31 = vpop.f32.mrf.mxu0  ;;  %256 = vadd.xlane.f32.xlu0 %v255_v30 }
  0xdd   :  { %v947_v32 = vadd.f32 %v705_v11, %v192_v31  ;;  %v258_v33 = vsel %vm236_vm1, %v943_v29, 0.0 }
  0xde   :  { %259 = vadd.xlane.f32.xlu1 %v258_v33  ;;  %v766_v34 = vpop.f32.mrf.mxu0 }
  0xdf   :  { %v951_v35 = vadd.f32 %v766_v34, %v705_v11  ;;  %v252_v38 = vsel %vm236_vm1, %v947_v32, 0.0 }
  0xe0   :  { %v205_v37 = vpop.f32.mrf.mxu0  ;;  %250 = vadd.xlane.f32.xlu0 %v249_v36 }
  0xe1   :  { %v957_v40 = vadd.f32 %v705_v11, %v205_v37  ;;  %v267_v42 = vsel %vm236_vm1, %v951_v35, 0.0 }
  0xe2   :  { %v767_v39 = vpop.f32.mrf.mxu0  ;;  %253 = vadd.xlane.f32.xlu1 %v252_v38 }
  0xe3   :  { %v959_v41 = vadd.f32 %v767_v39, %v705_v11  ;;  %v261_v47 = vsel %vm236_vm1, %v957_v40, 0.0 }
  0xe4   :  { %v208_v43 = vpop.f32.mrf.mxu0  ;;  %268 = vadd.xlane.f32.xlu0 %v267_v42 }
  0xe5   :  { %v963_v44 = vadd.f32 %v705_v11, %v208_v43  ;;  %v270_v45 = vsel %vm236_vm1, %v959_v41, 0.0 }
  0xe6   :  { %v770_v46 = vpop.f32.mrf.mxu0  ;;  %271 = vadd.xlane.f32.xlu1 %v270_v45 }
  0xe7   :  { %v264_v50 = vsel %vm236_vm1, %v963_v44, 0.0  ;;  %v973_v52 = vadd.f32 %v770_v46, %v705_v11 }
  0xe8   :  { %v221_v48 = vpop.f32.mrf.mxu0  ;;  %262 = vadd.xlane.f32.xlu0 %v261_v47 }
  0xe9   :  { %v969_v49 = vadd.f32 %v705_v11, %v221_v48  ;;  %v279_v58 = vsel %vm236_vm1, %v973_v52, 0.0 }
  0xea   :  { %v771_v51 = vpop.f32.mrf.mxu0  ;;  %265 = vadd.xlane.f32.xlu1 %v264_v50 }
  0xeb   :  { %v273_v53 = vsel %vm236_vm1, %v969_v49, 0.0  ;;  %v979_v56 = vadd.f32 %v771_v51, %v705_v11 }
  0xec   :  { %v224_v54 = vpop.f32.mrf.mxu0  ;;  %274 = vadd.xlane.f32.xlu0 %v273_v53 }
  0xed   :  { %v977_v55 = vadd.f32 %v705_v11, %v224_v54  ;;  %v282_v59 = vsel %vm236_vm1, %v979_v56, 0.0 }
  0xef   :  { %v276_v57 = vsel %vm236_vm1, %v977_v55, 0.0 }
  0xf0   :  { %277 = vadd.xlane.f32.xlu1 %v276_v57  ;;  %280 = vadd.xlane.f32.xlu0 %v279_v58 }
  0xf4   :  { %283 = vadd.xlane.f32.xlu1 %v282_v59 }
 0x15b   :  { %v245_v60 = vpop.xlane.xlu1 %244 }
 0x15c   :  { %v288_v61 = vmul.f32 0.015625, %v245_v60 }
 0x15d   :  { %v239_v62 = vpop.xlane.xlu0 %238 }
 0x15e   :  { %v988_v63 = vsub.f32 %v923_v13, %v288_v61  ;;  %v286_v0 = vmul.f32 0.015625, %v239_v62 }
 0x15f   :  { %v248_v1 = vpop.xlane.xlu1 %247 }
 0x160   :  { %v991_v2 = vsub.f32 %v925_v15, %v286_v0  ;;  %v289_v3 = vmul.f32 0.015625, %v248_v1  ;;  %v320_v4 = vmul.f32 %v988_v63, %v988_v63 }
 0x161   :  { %v242_v5 = vpop.xlane.xlu0 %241 }
 0x162   :  { %v996_v6 = vsub.f32 %v929_v18, %v289_v3  ;;  %v287_v7 = vmul.f32 0.015625, %v242_v5  ;;  %v340_v8 = vsel %vm236_vm1, %v320_v4, 0.0  ;;  %v318_v9 = vmul.f32 %v991_v2, %v991_v2 }
 0x163   :  { %341 = vadd.xlane.f32.xlu0 %v340_v8 }
 0x164   :  { %v1002_v10 = vsub.f32 %v933_v21, %v287_v7  ;;  %v321_v11 = vmul.f32 %v996_v6, %v996_v6  ;;  %v334_v15 = vsel %vm236_vm1, %v318_v9, 0.0 }
 0x165   :  { %v257_v12 = vpop.xlane.xlu0 %256 }
 0x166   :  { %v292_v13 = vmul.f32 0.015625, %v257_v12  ;;  %v343_v14 = vsel %vm236_vm1, %v321_v11, 0.0  ;;  %v319_v16 = vmul.f32 %v1002_v10, %v1002_v10 }
 0x167   :  { %v260_v17 = vpop.xlane.xlu1 %259  ;;  %344 = vadd.xlane.f32.xlu1 %v343_v14  ;;  %335 = vadd.xlane.f32.xlu0 %v334_v15 }
 0x168   :  { %v1011_v18 = vsub.f32 %v937_v24, %v292_v13  ;;  %v293_v19 = vmul.f32 0.015625, %v260_v17  ;;  %v337_v23 = vsel %vm236_vm1, %v319_v16, 0.0  ;;  %v837_v17 = vmov 0.0  }
 0x169   :  { %v251_v20 = vpop.xlane.xlu0 %250  ;;  %772 = vmatprep.subr.bf16.mxu1 %v837_v17  ;;  %780 = vmatprep.mubr.msk.bf16.mxu1 %vm838_vm2, %v837_v17 }
 0x16a   :  { %v1014_v21 = vsub.f32 %v943_v29, %v293_v19  ;;  %v290_v22 = vmul.f32 0.015625, %v251_v20  ;;  %v324_v25 = vmul.f32 %v1011_v18, %v1011_v18  ;;  %v797_v19 = vld [vmem:[%s1179_s5 + $0x18] sm:$0xff]   ;;  %v799_v20 = vld [vmem:[%s1179_s5 + $0x8] sm:$0xff]  }
 0x16b   :  { %v254_v26 = vpop.xlane.xlu1 %253  ;;  %338 = vadd.xlane.f32.xlu1 %v337_v23  ;;  %773 = vmatpush3.bf16.msra.mxu1 %v797_v19 }
 0x16c   :  { %v1020_v27 = vsub.f32 %v941_v28, %v290_v22  ;;  %v291_v30 = vmul.f32 0.015625, %v254_v26  ;;  %v352_v24 = vsel %vm236_vm1, %v324_v25, 0.0  ;;  %v325_v31 = vmul.f32 %v1014_v21, %v1014_v21  ;;  %774 = vmatprep.subr.bf16.mxu1 %v837_v17  ;;  %v800_v22 = vld [vmem:[%s1179_s5] sm:$0xff]  }
 0x16d   :  { %353 = vadd.xlane.f32.xlu0 %v352_v24  ;;  %v269_v29 = vpop.xlane.xlu0 %268 }
 0x16e   :  { %v1026_v33 = vsub.f32 %v947_v32, %v291_v30  ;;  %v296_v34 = vmul.f32 0.015625, %v269_v29  ;;  %v355_v36 = vsel %vm236_vm1, %v325_v31, 0.0  ;;  %v322_v37 = vmul.f32 %v1020_v27, %v1020_v27 }
 0x16f   :  { %v272_v38 = vpop.xlane.xlu1 %271  ;;  %356 = vadd.xlane.f32.xlu1 %v355_v36 }
 0x170   :  { %v1032_v28 = vsub.f32 %v951_v35, %v296_v34  ;;  %v297_v39 = vmul.f32 0.015625, %v272_v38  ;;  %v346_v42 = vsel %vm236_vm1, %v322_v37, 0.0  ;;  %v323_v43 = vmul.f32 %v1026_v33, %v1026_v33 }
 0x171   :  { %347 = vadd.xlane.f32.xlu0 %v346_v42  ;;  %v263_v32 = vpop.xlane.xlu0 %262 }
 0x172   :  { %v1038_v45 = vsub.f32 %v959_v41, %v297_v39  ;;  %v294_v46 = vmul.f32 0.015625, %v263_v32  ;;  %v349_v47 = vsel %vm236_vm1, %v323_v43, 0.0  ;;  %v328_v48 = vmul.f32 %v1032_v28, %v1032_v28 }
 0x173   :  { %v266_v50 = vpop.xlane.xlu1 %265  ;;  %350 = vadd.xlane.f32.xlu1 %v349_v47 }
 0x174   :  { %v1044_v35 = vsub.f32 %v957_v40, %v294_v46  ;;  %v295_v51 = vmul.f32 0.015625, %v266_v50  ;;  %v364_v53 = vsel %vm236_vm1, %v328_v48, 0.0  ;;  %v329_v54 = vmul.f32 %v1038_v45, %v1038_v45 }
 0x175   :  { %365 = vadd.xlane.f32.xlu0 %v364_v53  ;;  %v275_v41 = vpop.xlane.xlu0 %274 }
 0x176   :  { %v1050_v57 = vsub.f32 %v963_v44, %v295_v51  ;;  %v298_v58 = vmul.f32 0.015625, %v275_v41  ;;  %v367_v59 = vsel %vm236_vm1, %v329_v54, 0.0  ;;  %v326_v60 = vmul.f32 %v1044_v35, %v1044_v35 }
 0x177   :  { %368 = vadd.xlane.f32.xlu1 %v367_v59 }
 0x178   :  { %v1056_v40 = vsub.f32 %v969_v49, %v298_v58  ;;  %v358_v61 = vsel %vm236_vm1, %v326_v60, 0.0  ;;  %v327_v62 = vmul.f32 %v1050_v57, %v1050_v57  ;;  %v1098_v60 = vld [vmem:[%s1180_s3] ss:$0 sm:$0xff] }
 0x179   :  { %v278_v0 = vpop.xlane.xlu1 %277  ;;  %359 = vadd.xlane.f32.xlu0 %v358_v61  ;;  %v281_v1 = vpop.xlane.xlu0 %280 }
 0x17a   :  { %v299_v44 = vmul.f32 0.015625, %v278_v0  ;;  %v300_v3 = vmul.f32 0.015625, %v281_v1  ;;  %v361_v4 = vsel %vm236_vm1, %v327_v62, 0.0  ;;  %v330_v5 = vmul.f32 %v1056_v40, %v1056_v40 }
 0x17b   :  { %362 = vadd.xlane.f32.xlu1 %v361_v4 }
 0x17c   :  { %v1065_v7 = vsub.f32 %v977_v55, %v299_v44  ;;  %v1068_v49 = vsub.f32 %v973_v52, %v300_v3  ;;  %v370_v8 = vsel %vm236_vm1, %v330_v5, 0.0 }
 0x17d   :  { %v284_v9 = vpop.xlane.xlu1 %283  ;;  %371 = vadd.xlane.f32.xlu0 %v370_v8 }
 0x17e   :  { %v301_v11 = vmul.f32 0.015625, %v284_v9  ;;  %v331_v12 = vmul.f32 %v1065_v7, %v1065_v7  ;;  %v332_v13 = vmul.f32 %v1068_v49, %v1068_v49 }
 0x180   :  { %v1076_v14 = vsub.f32 %v979_v56, %v301_v11  ;;  %v373_v55 = vsel %vm236_vm1, %v331_v12, 0.0  ;;  %v376_v15 = vsel %vm236_vm1, %v332_v13, 0.0  ;;  %v798_v56 = vld [vmem:[%s1179_s5 + $0x10] sm:$0xff]   ;;  %v1105_v11 = vld [vmem:[%s1181_s4] ss:$0 sm:$0xff] }
 0x181   :  { %374 = vadd.xlane.f32.xlu1 %v373_v55  ;;  %377 = vadd.xlane.f32.xlu0 %v376_v15 }
 0x182   :  { %v333_v52 = vmul.f32 %v1076_v14, %v1076_v14  ;;  %775 = vmatpush3.bf16.msra.mxu1 %v798_v56 }
 0x183   :  { %776 = vmatprep.subr.bf16.mxu1 %v837_v17 }
 0x184   :  { %v379_v16 = vsel %vm236_vm1, %v333_v52, 0.0 }
 0x185   :  { %380 = vadd.xlane.f32.xlu1 %v379_v16 }
 0x186   :  { %777 = vmatpush3.bf16.msra.mxu1 %v799_v20 }
 0x187   :  { %778 = vmatprep.subr.bf16.mxu1 %v837_v17 }
 0x18a   :  { %779 = vmatpush3.bf16.msra.mxu1 %v800_v22 }
 0x1ec   :  { %v342_v23 = vpop.xlane.xlu0 %341 }
 0x1ed   :  { %v384_v25 = vmul.f32 0.015625, %v342_v23 }
 0x1ef   :  { %v400_v26 = vadd.f32 1e-05, %v384_v25 }
 0x1f0   :  { %v345_v30 = vpop.xlane.xlu1 %344  ;;  %v336_v24 = vpop.xlane.xlu0 %335 }
 0x1f1   :  { %801 = vrsqrt.f32 %v400_v26  ;;  %v385_v31 = vmul.f32 0.015625, %v345_v30  ;;  %v382_v29 = vmul.f32 0.015625, %v336_v24 }
 0x1f3   :  { %v401_v34 = vadd.f32 1e-05, %v385_v31  ;;  %v398_v36 = vadd.f32 1e-05, %v382_v29 }
 0x1f4   :  { %v339_v37 = vpop.xlane.xlu1 %338 }
 0x1f5   :  { %803 = vrsqrt.f32 %v401_v34  ;;  %v383_v38 = vmul.f32 0.015625, %v339_v37 }
 0x1f6   :  { %805 = vrsqrt.f32 %v398_v36  ;;  %v354_v39 = vpop.xlane.xlu0 %353 }
 0x1f7   :  { %v399_v42 = vadd.f32 1e-05, %v383_v38  ;;  %v388_v43 = vmul.f32 0.015625, %v354_v39 }
 0x1f8   :  { %v357_v32 = vpop.xlane.xlu1 %356 }
 0x1f9   :  { %807 = vrsqrt.f32 %v399_v42  ;;  %v404_v46 = vadd.f32 1e-05, %v388_v43  ;;  %v389_v47 = vmul.f32 0.015625, %v357_v32 }
 0x1fa   :  { %v348_v48 = vpop.xlane.xlu0 %347 }
 0x1fb   :  { %809 = vrsqrt.f32 %v404_v46  ;;  %v405_v50 = vadd.f32 1e-05, %v389_v47  ;;  %v386_v51 = vmul.f32 0.015625, %v348_v48 }
 0x1fc   :  { %v351_v53 = vpop.xlane.xlu1 %350 }
 0x1fd   :  { %811 = vrsqrt.f32 %v405_v50  ;;  %v402_v54 = vadd.f32 1e-05, %v386_v51  ;;  %v387_v41 = vmul.f32 0.015625, %v351_v53 }
 0x1fe   :  { %v802_v58 = vpop.eup %801  ;;  %v366_v59 = vpop.xlane.xlu0 %365 }
 0x1ff   :  { %v432_v61 = vmul.f32 %v802_v58, %v988_v63  ;;  %813 = vrsqrt.f32 %v402_v54  ;;  %v403_v62 = vadd.f32 1e-05, %v387_v41  ;;  %v392_v0 = vmul.f32 0.015625, %v366_v59 }
 0x200   :  { %v369_v1 = vpop.xlane.xlu1 %368 }
 0x201   :  { %815 = vrsqrt.f32 %v403_v62  ;;  %v408_v44 = vadd.f32 1e-05, %v392_v0  ;;  %v393_v3 = vmul.f32 0.015625, %v369_v1  ;;  %v455_v5 = vmul.f32 %v1098_v60, %v432_v61 }
 0x202   :  { %v804_v4 = vpop.eup %803  ;;  %v360_v8 = vpop.xlane.xlu0 %359 }
 0x203   :  { %v806_v9 = vpop.eup %805  ;;  %v433_v12 = vmul.f32 %v804_v4, %v996_v6  ;;  %817 = vrsqrt.f32 %v408_v44  ;;  %v409_v63 = vadd.f32 1e-05, %v393_v3  ;;  %v390_v55 = vmul.f32 0.015625, %v360_v8 }
 0x204   :  { %v430_v13 = vmul.f32 %v806_v9, %v991_v2  ;;  %v363_v15 = vpop.xlane.xlu1 %362  ;;  %v478_v19 = vadd.f32 %v1105_v11, %v455_v5 }
 0x205   :  { %v456_v52 = vmul.f32 %v1098_v60, %v433_v12  ;;  %819 = vrsqrt.f32 %v409_v63  ;;  %v391_v16 = vmul.f32 0.015625, %v363_v15  ;;  %v406_v20 = vadd.f32 1e-05, %v390_v55 }
 0x206   :  { %v808_v17 = vpop.eup %807  ;;  %v453_v56 = vmul.f32 %v1098_v60, %v430_v13  ;;  %v372_v22 = vpop.xlane.xlu0 %371  ;;  %v501_v36 = vsel %vm236_vm1, %v478_v19, 0.0 }
 0x207   :  { %v479_v23 = vadd.f32 %v1105_v11, %v456_v52  ;;  %v431_v6 = vmul.f32 %v808_v17, %v1002_v10  ;;  %v407_v25 = vadd.f32 1e-05, %v391_v16  ;;  %v394_v26 = vmul.f32 0.015625, %v372_v22 }
 0x208   :  { %v810_v2 = vpop.eup %809  ;;  %v476_v30 = vadd.f32 %v1105_v11, %v453_v56  ;;  %821 = vrsqrt.f32 %v406_v20 }
 0x209   :  { %v502_v24 = vsel %vm236_vm1, %v479_v23, 0.0  ;;  %v454_v31 = vmul.f32 %v1098_v60, %v431_v6  ;;  %v436_v29 = vmul.f32 %v810_v2, %v1011_v18  ;;  %823 = vrsqrt.f32 %v407_v25 }
 0x20a   :  { %v812_v34 = vpop.eup %811  ;;  %v410_v37 = vadd.f32 1e-05, %v394_v26  ;;  %v375_v38 = vpop.xlane.xlu1 %374  ;;  %v503_v47 = vadd.f32 %v502_v24, %v501_v36  ;;  %v492_v18 = vsel %vm236_vm1, %v476_v30, 0.0 }
 0x20b   :  { %v378_v39 = vpop.xlane.xlu0 %377  ;;  %v477_v10 = vadd.f32 %v1105_v11, %v454_v31  ;;  %v459_v42 = vmul.f32 %v1098_v60, %v436_v29  ;;  %v437_v43 = vmul.f32 %v812_v34, %v1014_v21  ;;  %v395_v32 = vmul.f32 0.015625, %v375_v38 }
 0x20c   :  { %v814_v46 = vpop.eup %813  ;;  %825 = vrsqrt.f32 %v410_v37  ;;  %v396_v48 = vmul.f32 0.015625, %v378_v39  ;;  %v504_v63 = vrot.slane %v503_v47, 4 }
 0x20d   :  { %v493_v50 = vsel %vm236_vm1, %v477_v10, 0.0  ;;  %v460_v51 = vmul.f32 %v1098_v60, %v437_v43  ;;  %v434_v53 = vmul.f32 %v814_v46, %v1020_v27  ;;  %v482_v58 = vadd.f32 %v1105_v11, %v459_v42 }
 0x20e   :  { %v816_v54 = vpop.eup %815  ;;  %v494_v41 = vadd.f32 %v493_v50, %v492_v18  ;;  %v411_v59 = vadd.f32 1e-05, %v395_v32  ;;  %v412_v61 = vadd.f32 1e-05, %v396_v48  ;;  %v381_v21 = vpop.xlane.xlu1 %380  ;;  %v505_v6 = vadd.f32 %v504_v63, %v503_v47 }
 0x20f   :  { %v483_v62 = vadd.f32 %v1105_v11, %v460_v51  ;;  %v457_v0 = vmul.f32 %v1098_v60, %v434_v53  ;;  %v435_v1 = vmul.f32 %v816_v54, %v1026_v33  ;;  %v397_v4 = vmul.f32 0.015625, %v381_v21 }
 0x210   :  { %v818_v44 = vpop.eup %817  ;;  %v495_v3 = vrot.slane %v494_v41, 4  ;;  %827 = vrsqrt.f32 %v411_v59  ;;  %v519_v13 = vsel %vm236_vm1, %v482_v58, 0.0  ;;  %v506_v43 = vrot.slane %v505_v6, 2 }
 0x211   :  { %v520_v5 = vsel %vm236_vm1, %v483_v62, 0.0  ;;  %v480_v27 = vadd.f32 %v1105_v11, %v457_v0  ;;  %v458_v8 = vmul.f32 %v1098_v60, %v435_v1  ;;  %v440_v9 = vmul.f32 %v818_v44, %v1032_v28 }
 0x212   :  { %v820_v12 = vpop.eup %819  ;;  %829 = vrsqrt.f32 %v412_v61  ;;  %v521_v55 = vadd.f32 %v520_v5, %v519_v13  ;;  %v496_v16 = vadd.f32 %v495_v3, %v494_v41  ;;  %v413_v17 = vadd.f32 1e-05, %v397_v4 }
 0x213   :  { %v481_v33 = vadd.f32 %v1105_v11, %v458_v8  ;;  %v463_v15 = vmul.f32 %v1098_v60, %v440_v9  ;;  %v441_v52 = vmul.f32 %v820_v12, %v1038_v45  ;;  %v510_v56 = vsel %vm236_vm1, %v480_v27, 0.0 }
 0x214   :  { %v522_v2 = vrot.slane %v521_v55, 4  ;;  %831 = vrsqrt.f32 %v413_v17  ;;  %v497_v34 = vrot.slane %v496_v16, 2 }
 0x215   :  { %v822_v19 = vpop.eup %821  ;;  %v511_v20 = vsel %vm236_vm1, %v481_v33, 0.0  ;;  %v486_v28 = vadd.f32 %v1105_v11, %v463_v15  ;;  %v464_v22 = vmul.f32 %v1098_v60, %v441_v52 }
 0x216   :  { %v824_v23 = vpop.eup %823  ;;  %v512_v25 = vadd.f32 %v511_v20, %v510_v56  ;;  %v438_v26 = vmul.f32 %v822_v19, %v1044_v35  ;;  %v498_v53 = vadd.f32 %v497_v34, %v496_v16 }
 0x217   :  { %v487_v30 = vadd.f32 %v1105_v11, %v464_v22  ;;  %v439_v45 = vmul.f32 %v824_v23, %v1050_v57  ;;  %v537_v36 = vsel %vm236_vm1, %v486_v28, 0.0  ;;  %v523_v57 = vadd.f32 %v522_v2, %v521_v55 }
 0x218   :  { %v513_v24 = vrot.slane %v512_v25, 4  ;;  %v461_v31 = vmul.f32 %v1098_v60, %v438_v26  ;;  %v499_v3 = vrot.slane %v498_v53, 1 }
 0x219   :  { %v826_v29 = vpop.eup %825  ;;  %v538_v37 = vsel %vm236_vm1, %v487_v30, 0.0  ;;  %v462_v38 = vmul.f32 %v1098_v60, %v439_v45  ;;  %v524_v61 = vrot.slane %v523_v57, 2 }
 0x21a   :  { %v514_v39 = vadd.f32 %v513_v24, %v512_v25  ;;  %v539_v10 = vadd.f32 %v538_v37, %v537_v36  ;;  %v484_v35 = vadd.f32 %v1105_v11, %v461_v31  ;;  %v442_v42 = vmul.f32 %v826_v29, %v1056_v40 }
 0x21b   :  { %v485_v32 = vadd.f32 %v1105_v11, %v462_v38  ;;  %v507_v40 = vadd.f32 %v506_v43, %v505_v6  ;;  %v500_v52 = vadd.f32 %v499_v3, %v498_v53 }
 0x21c   :  { %v515_v46 = vrot.slane %v514_v39, 2  ;;  %v465_v47 = vmul.f32 %v1098_v60, %v442_v42  ;;  %v540_v48 = vrot.slane %v539_v10, 4  ;;  %v528_v50 = vsel %vm236_vm1, %v484_v35, 0.0 }
 0x21d   :  { %v828_v18 = vpop.eup %827  ;;  %v529_v51 = vsel %vm236_vm1, %v485_v32, 0.0  ;;  %v508_v8 = vrot.slane %v507_v40, 1  ;;  %v565_v2 = vmul.f32 0.0625, %v500_v52 }
 0x21e   :  { %v516_v54 = vadd.f32 %v515_v46, %v514_v39  ;;  %v530_v41 = vadd.f32 %v529_v51, %v528_v50  ;;  %v443_v58 = vmul.f32 %v828_v18, %v1065_v7  ;;  %v488_v21 = vadd.f32 %v1105_v11, %v465_v47 }
 0x21f   :  { %v830_v59 = vpop.eup %829  ;;  %v541_v44 = vadd.f32 %v540_v48, %v539_v10  ;;  %v525_v7 = vadd.f32 %v524_v61, %v523_v57  ;;  %v509_v28 = vadd.f32 %v508_v8, %v507_v40  ;;  %v573_v39 = vpack.c.bf16 %v565_v2, %v565_v2 }
 0x220   :  { %v531_v62 = vrot.slane %v530_v41, 4  ;;  %v466_v0 = vmul.f32 %v1098_v60, %v443_v58  ;;  %v444_v1 = vmul.f32 %v830_v59, %v1068_v49  ;;  %v517_v5 = vrot.slane %v516_v54, 1 }
 0x221   :  { %v832_v12 = vpop.eup %831  ;;  %v546_v63 = vsel %vm236_vm1, %v488_v21, 0.0  ;;  %v542_v33 = vrot.slane %v541_v44, 2  ;;  %v526_v22 = vrot.slane %v525_v7, 1  ;;  %v604_v48 = vunpack.c.l.b16 %v573_v39 }
 0x222   :  { %v489_v4 = vadd.f32 %v1105_v11, %v466_v0  ;;  %v532_v27 = vadd.f32 %v531_v62, %v530_v41  ;;  %v467_v9 = vmul.f32 %v1098_v60, %v444_v1  ;;  %v445_v15 = vmul.f32 %v832_v12, %v1076_v14 }
 0x223   :  { %v518_v16 = vadd.f32 %v517_v5, %v516_v54  ;;  %v543_v6 = vadd.f32 %v542_v33, %v541_v44  ;;  %v527_v29 = vadd.f32 %v526_v22, %v525_v7  ;;  %v727_v33 = vld [vmem:[%s1182_s6] ss:$0 sm:$0xff] }
 0x224   :  { %v547_v13 = vsel %vm236_vm1, %v489_v4, 0.0  ;;  %v533_v55 = vrot.slane %v532_v27, 2  ;;  %v490_v19 = vadd.f32 %v1105_v11, %v467_v9  ;;  %v468_v56 = vmul.f32 %v1098_v60, %v445_v15 }
 0x225   :  { %v548_v49 = vadd.f32 %v547_v13, %v546_v63  ;;  %v567_v30 = vmul.f32 0.0625, %v518_v16  ;;  %v544_v34 = vrot.slane %v543_v6, 1  ;;  %v566_v60 = vmul.f32 0.0625, %v509_v28 }
 0x226   :  { %v534_v17 = vadd.f32 %v533_v55, %v532_v27  ;;  %v491_v25 = vadd.f32 %v1105_v11, %v468_v56  ;;  %v555_v24 = vsel %vm236_vm1, %v490_v19, 0.0  ;;  %v568_v57 = vmul.f32 0.0625, %v527_v29 }
 0x227   :  { %v549_v20 = vrot.slane %v548_v49, 4  ;;  %v575_v42 = vpack.c.bf16 %v567_v30, %v567_v30  ;;  %v545_v11 = vadd.f32 %v544_v34, %v543_v6  ;;  %v574_v32 = vpack.c.bf16 %v566_v60, %v566_v60 }
 0x228   :  { %v535_v23 = vrot.slane %v534_v17, 1  ;;  %v556_v31 = vsel %vm236_vm1, %v491_v25, 0.0  ;;  %v576_v41 = vpack.c.bf16 %v568_v57, %v568_v57 }
 0x229   :  { %v550_v26 = vadd.f32 %v549_v20, %v548_v49  ;;  %v557_v36 = vadd.f32 %v556_v31, %v555_v24  ;;  %v606_v51 = vunpack.c.l.b16 %v575_v42  ;;  %v570_v54 = vmul.f32 0.0625, %v545_v11 }
 0x22a   :  { %v536_v45 = vadd.f32 %v535_v23, %v534_v17  ;;  %v605_v58 = vunpack.c.l.b16 %v574_v32  ;;  %v607_v44 = vunpack.c.l.b16 %v576_v41 }
 0x22b   :  { %v551_v14 = vrot.slane %v550_v26, 2  ;;  %v558_v38 = vrot.slane %v557_v36, 4  ;;  %v578_v1 = vpack.c.bf16 %v570_v54, %v570_v54 }
 0x22c   :  { %v569_v35 = vmul.f32 0.0625, %v536_v45  ;;  %v613_v40 = vsel %vm612_vm3, %v605_v58, %v604_v48 }
 0x22d   :  { %v552_v37 = vadd.f32 %v551_v14, %v550_v26  ;;  %v559_v43 = vadd.f32 %v558_v38, %v557_v36  ;;  %v615_v62 = vsel %vm614_vm4, %v606_v51, %v613_v40  ;;  %v609_v9 = vunpack.c.l.b16 %v578_v1 }
 0x22e   :  { %v577_v50 = vpack.c.bf16 %v569_v35, %v569_v35  ;;  %v617_v4 = vsel %vm616_vm5, %v607_v44, %v615_v62 }
 0x22f   :  { %v553_v10 = vrot.slane %v552_v37, 1  ;;  %v560_v47 = vrot.slane %v559_v43, 2 }
 0x230   :  { %v608_v21 = vunpack.c.l.b16 %v577_v50 }
 0x231   :  { %v554_v46 = vadd.f32 %v553_v10, %v552_v37  ;;  %v561_v53 = vadd.f32 %v560_v47, %v559_v43 }
 0x232   :  { %v619_v27 = vsel %vm618_vm6, %v608_v21, %v617_v4 }
 0x233   :  { %v571_v18 = vmul.f32 0.0625, %v554_v46  ;;  %v562_v59 = vrot.slane %v561_v53, 1  ;;  %v621_v12 = vsel %vm620_vm7, %v609_v9, %v619_v27 }
 0x235   :  { %v579_v61 = vpack.c.bf16 %v571_v18, %v571_v18  ;;  %v563_v0 = vadd.f32 %v562_v59, %v561_v53 }
 0x237   :  { %v572_v3 = vmul.f32 0.0625, %v563_v0  ;;  %v610_v5 = vunpack.c.l.b16 %v579_v61 }
 0x239   :  { %v580_v8 = vpack.c.bf16 %v572_v3, %v572_v3  ;;  %v623_v63 = vsel %vm622_vm8, %v610_v5, %v621_v12 }
 0x23b   :  { %v611_v7 = vunpack.c.l.b16 %v580_v8 }
 0x23d   :  { %v625_v13 = vsel %vm624_vm9, %v611_v7, %v623_v63 }
 0x23e   :  { %v626_v55 = vpack.c.b16 %v625_v13, %v625_v13 }
 0x240   :  { %781 = vmatmul.mubr.msk.bf16.vlgmr.msra.gmra.mxu1 %vm236_vm1, %v626_v55 }
 0x300   :  { %v688_v15 = vpop.f32.mrf.mxu1 }
 0x301   :  { %v689_v49 = vadd.f32 %v727_v33, %v688_v15 }
 0x302   :  { %v782_v52 = vpop.f32.mrf.mxu1 }
 0x303   :  { %v733_v16 = vmul.f32 -1.442695, %v689_v49 }
 0x304   :  { %v691_v17 = vpop.f32.mrf.mxu1 }
 0x305   :  { %833 = vpow2.f32 %v733_v16 }
 0x306   :  { %v783_v19 = vpop.f32.mrf.mxu1 }
 0x312   :  { %v834_v56 = vpop.eup %833 }
 0x313   :  { %v697_v20 = vadd.f32 1.0, %v834_v56 }
 0x315   :  { %835 = vrcp.f32 %v697_v20 }
 0x322   :  { %v836_v28 = vpop.eup %835 }
 0x323   :  { %700 = vst [vmem:[%s1183_s7] sm:$0xff] %v836_v28 }

</bundles_post_ra>
